<compile_context>
chip_gen: v5e
topology: v5e:2x2
jax: 0.10.0
libtpu: 0.0.40
codegen_flags: <defaults>
</compile_context>

<pallas_src>
import functools

import jax
import jax.numpy as jnp
from jax.experimental import pallas as pl
from jax.experimental.pallas import tpu as pltpu


# ---------------------------------------------------------------------------
# Kernels
# ---------------------------------------------------------------------------
def _sobel_kernel_flat(x_ref, o_ref, *, height, width):
    """Lane-dense path: image flattened onto one (H*W)-long lane axis.

    conv2d's zero padding is emulated with circular pltpu.roll (XLU) followed by
    zeroing the wrapped positions via iota-derived boundary masks.
    """
    h, w = height, width
    l = h * w
    x = x_ref[...].astype(jnp.float32)

    p = jax.lax.broadcasted_iota(jnp.int32, x.shape, x.ndim - 1)  # flat index
    j = p % w                                                     # column index
    left_edge = j == 0
    right_edge = j == w - 1
    top_edge = p < w                                              # row 0
    bot_edge = p >= l - w                                         # row H-1

    # Horizontal neighbours x[i, j+1] / x[i, j-1] with zero boundary.
    x_l = jnp.where(right_edge, 0.0, pltpu.roll(x, (l - 1) % l, axis=1))
    x_r = jnp.where(left_edge, 0.0, pltpu.roll(x, 1 % l, axis=1))

    # Separable horizontal passes.
    hx = x_l - x_r               # [-1, 0, 1] along W
    hy = x_l + x_r + (x + x)     # [ 1, 2, 1] along W  (2*x as add)

    # gx path first: fewer concurrently live full-tile f32 intermediates.
    gx = (jnp.where(top_edge, 0.0, pltpu.roll(hx, w % l, axis=1))          # hx[i-1]
          + jnp.where(bot_edge, 0.0, pltpu.roll(hx, (l - w) % l, axis=1))  # hx[i+1]
          + (hx + hx))                                                     # [1,2,1] along H
    acc = jnp.abs(gx)

    gy = (jnp.where(top_edge, 0.0, pltpu.roll(hy, w % l, axis=1))
          - jnp.where(bot_edge, 0.0, pltpu.roll(hy, (l - w) % l, axis=1)))  # [1,0,-1] along H

    o_ref[...] = (acc + jnp.abs(gy)).astype(o_ref.dtype)


def _sobel_kernel_3d(x_ref, o_ref):
    """Generic fallback: (TB, H, W) blocks, zero-filled shift construction."""
    x = x_ref[...].astype(jnp.float32)

    zc = jnp.zeros_like(x[:, :, :1])   # one zero column (lane axis)
    zr = jnp.zeros_like(x[:, :1, :])   # one zero row    (sublane axis)

    x_l = jnp.concatenate([x[:, :, 1:], zc], axis=2)   # x[b, i, j+1]
    x_r = jnp.concatenate([zc, x[:, :, :-1]], axis=2)  # x[b, i, j-1]

    hx = x_l - x_r
    hy = x_l + x_r + (x + x)

    # gx path first, then gy (lower peak live intermediates).
    hx_d = jnp.concatenate([zr, hx[:, :-1, :]], axis=1)  # hx[b, i-1, j]
    hx_u = jnp.concatenate([hx[:, 1:, :], zr], axis=1)   # hx[b, i+1, j]
    acc = jnp.abs(hx_d + hx_u + (hx + hx))

    hy_d = jnp.concatenate([zr, hy[:, :-1, :]], axis=1)
    hy_u = jnp.concatenate([hy[:, 1:, :], zr], axis=1)
    o_ref[...] = (acc + jnp.abs(hy_d - hy_u)).astype(o_ref.dtype)


# ---------------------------------------------------------------------------
# Generation-aware tiling
# ---------------------------------------------------------------------------
@functools.lru_cache(maxsize=None)
def _chip_caps():
    """Returns (vmem_limit_bytes, multi_tc) for the local TPU, best effort."""
    vmem_cap = None
    try:
        vmem_cap = int(pltpu.get_tpu_info().vmem_capacity_bytes)
    except Exception:
        vmem_cap = None
    if not vmem_cap:
        vmem_cap = 64 * 1024 * 1024            # conservative floor (v7x per-TC)
    # ~48 MiB on 64-MiB v7x, ~96 MiB on 128-MiB v5e/v6e.
    vmem_limit = min((3 * vmem_cap) // 4, 96 * 1024 * 1024)

    kind = ""
    try:
        kind = jax.devices()[0].device_kind.lower()
    except Exception:
        kind = ""
    # v5e / v6e have a single TensorCore per chip; the ">=2 grid steps" cap only
    # pays off on multi-TC parts (v7x / megacore) where "parallel" axes shard.
    single_tc = ("v5e" in kind) or ("v5 lite" in kind) or ("v6" in kind)
    return vmem_limit, (not single_tc)


def _pick_batch_tile(n, hw, itemsize, vmem_limit, multi_tc):
    """Images per grid step and the VMEM-limited max images per step."""
    isz = max(itemsize, 4)  # kernel upcasts to f32
    # Per-image working set per step: 2x double-buffered input, 2x output,
    # ~4 concurrently-live full-tile f32 intermediates inside the body.
    per_img = hw * (2 * isz + 2 * isz + 4 * 4)
    vmem_imgs = max(1, (vmem_limit * 4 // 5) // per_img)
    # ~4 MiB input blocks sit on the HBM roofline and amortize the ~0.35us/step
    # grid overhead.
    target_imgs = max(1, (4 << 20) // max(hw * itemsize, 1))
    tb = max(1, min(n, vmem_imgs, target_imgs))
    if multi_tc and n >= 2:
        tb = min(tb, -(-n // 2))  # keep >= 2 grid steps for the 2 TensorCores
    return tb, vmem_imgs


# ---------------------------------------------------------------------------
# Public wrapper
# ---------------------------------------------------------------------------
def sobelxy(x):
    """x: (N, 1, H, W) -> |sobel_x(x)| + |sobel_y(x)| (F.conv2d, padding=1)."""
    n, c, h, w = x.shape
    assert c == 1, "Sobelxy uses single-channel (1, 1, 3, 3) conv weights"
    hw = h * w
    itemsize = jnp.dtype(x.dtype).itemsize

    vmem_limit, multi_tc = _chip_caps()
    tb, vmem_imgs = _pick_batch_tile(n, hw, itemsize, vmem_limit, multi_tc)

    # Lane-dense flattened layout when the flat image length is a lane multiple
    # AND the (8, 128) rule can be satisfied on the batch-block dim.
    use_flat = (hw % 128 == 0)
    if use_flat:
        if tb >= n:
            tb = n
        elif tb >= 8:
            tb -= tb % 8
        elif n <= vmem_imgs:
            tb = n   # tiny batch: one lane-dense step beats a TC split
        else:
            use_flat = False  # huge images with small tb: fall back to 3-D blocks

    cost = pl.CostEstimate(
        flops=20 * n * hw,
        transcendentals=0,
        bytes_accessed=2 * n * hw * itemsize,
    )
    cparams = pltpu.CompilerParams(
        dimension_semantics=("parallel",),
        vmem_limit_bytes=vmem_limit,
    )
    grid = (pl.cdiv(n, tb),)

    if use_flat:
        out = pl.pallas_call(
            functools.partial(_sobel_kernel_flat, height=h, width=w),
            out_shape=jax.ShapeDtypeStruct((n, hw), x.dtype),
            grid_spec=pltpu.PrefetchScalarGridSpec(
                num_scalar_prefetch=0,
                grid=grid,
                in_specs=[pl.BlockSpec((tb, hw), lambda b: (b, 0))],
                out_specs=pl.BlockSpec((tb, hw), lambda b: (b, 0)),
            ),
            compiler_params=cparams,
            cost_estimate=cost,
        )(x.reshape(n, hw))
    else:
        out = pl.pallas_call(
            _sobel_kernel_3d,
            out_shape=jax.ShapeDtypeStruct((n, h, w), x.dtype),
            grid_spec=pltpu.PrefetchScalarGridSpec(
                num_scalar_prefetch=0,
                grid=grid,
                # Last two block dims equal the full array dims -> (8,128) rule OK.
                in_specs=[pl.BlockSpec((tb, h, w), lambda b: (b, 0, 0))],
                out_specs=pl.BlockSpec((tb, h, w), lambda b: (b, 0, 0)),
            ),
            compiler_params=cparams,
            cost_estimate=cost,
        )(x.reshape(n, h, w))

    return out.reshape(n, c, h, w)


# ---------------------------------------------------------------------------
# Pure-JAX reference (matches F.conv2d semantics: cross-correlation, pad=1)
# ---------------------------------------------------------------------------
def _reference_sobelxy(x):
    kx = jnp.array([[-1.0, 0.0, 1.0], [-2.0, 0.0, 2.0], [-1.0, 0.0, 1.0]],
                   jnp.float32).reshape(1, 1, 3, 3)
    ky = jnp.array([[1.0, 2.0, 1.0], [0.0, 0.0, 0.0], [-1.0, -2.0, -1.0]],
                   jnp.float32).reshape(1, 1, 3, 3)
    xf = x.astype(jnp.float32)
    dn = jax.lax.conv_dimension_numbers(x.shape, kx.shape, ("NCHW", "OIHW", "NCHW"))
    gx = jax.lax.conv_general_dilated(xf, kx, (1, 1), ((1, 1), (1, 1)),
                                      dimension_numbers=dn)
    gy = jax.lax.conv_general_dilated(xf, ky, (1, 1), ((1, 1), (1, 1)),
                                      dimension_numbers=dn)
    return (jnp.abs(gx) + jnp.abs(gy)).astype(x.dtype)


if __name__ == "__main__":
    key = jax.random.PRNGKey(0)

    # Primary check: module-sized input (batch=2, channel=1, 16x16) -> exercises
    # the lane-dense flattened path (H*W = 256 is a multiple of 128).
    x = jax.random.normal(key, (2, 1, 16, 16), dtype=jnp.float32)
    out = jax.block_until_ready(sobelxy(x))
    ref = _reference_sobelxy(x)
    assert out.shape == x.shape
    assert jnp.allclose(out, ref, atol=1e-4, rtol=1e-4), "flat-path mismatch vs reference"

    # Secondary check: odd spatial size -> exercises the generic 3-D fallback path.
    x2 = jax.random.normal(jax.random.PRNGKey(1), (3, 1, 11, 13), dtype=jnp.float32)
    out2 = jax.block_until_ready(sobelxy(x2))
    ref2 = _reference_sobelxy(x2)
    assert jnp.allclose(out2, ref2, atol=1e-4, rtol=1e-4), "3d-path mismatch vs reference"

    print("KERNEL_OK")
</pallas_src>

<mosaic_0001>
module attributes {stable_mosaic.version = 11 : i64} {
  func.func @_sobel_kernel_flat(%arg0: i32, %arg1: memref<2x256xf32, #tpu.memory_space<vmem>>, %arg2: memref<2x256xf32, #tpu.memory_space<vmem>>) attributes {dimension_semantics = [#tpu.dimension_semantics<parallel>], iteration_bounds = array<i64: 1>, scalar_prefetch = 0 : i64, scratch_operands = 0 : i64, tpu.core_type = #tpu.core_type<tc>, window_params = [{transform_indices = @transform_0, window_bounds = array<i64: 2, 256>}, {transform_indices = @transform_1, window_bounds = array<i64: 2, 256>}]} {
    %c0 = arith.constant 0 : index
    %c0_0 = arith.constant 0 : index
    %0 = vector.load %arg1[%c0, %c0_0] : memref<2x256xf32, #tpu.memory_space<vmem>>, vector<2x256xf32>
    %1 = tpu.iota {dimensions = array<i32: 1>} : vector<2x256xi32>
    %c16_i32 = arith.constant 16 : i32
    %c0_i32 = arith.constant 0 : i32
    %2 = arith.cmpi eq, %c16_i32, %c0_i32 : i32
    %c1_i32 = arith.constant 1 : i32
    %3 = arith.select %2, %c1_i32, %c16_i32 : i32
    %4 = vector.broadcast %3 : i32 to vector<2x256xi32>
    %5 = arith.remsi %1, %4 : vector<2x256xi32>
    %c0_i32_1 = arith.constant 0 : i32
    %6 = vector.broadcast %c0_i32_1 : i32 to vector<2x256xi32>
    %7 = arith.cmpi ne, %5, %6 : vector<2x256xi32>
    %c0_i32_2 = arith.constant 0 : i32
    %8 = vector.broadcast %c0_i32_2 : i32 to vector<2x256xi32>
    %9 = arith.cmpi slt, %5, %8 : vector<2x256xi32>
    %c0_i32_3 = arith.constant 0 : i32
    %10 = arith.cmpi slt, %3, %c0_i32_3 : i32
    %11 = vector.broadcast %10 : i1 to vector<2x256xi1>
    %12 = vector.broadcast %11 : vector<2x256xi1> to vector<2x256xi1>
    %13 = arith.xori %9, %12 : vector<2x256xi1>
    %14 = arith.andi %13, %7 : vector<2x256xi1>
    %15 = vector.broadcast %3 : i32 to vector<2x256xi32>
    %16 = arith.addi %5, %15 : vector<2x256xi32>
    %17 = arith.select %14, %16, %5 : vector<2x256xi1>, vector<2x256xi32>
    %c0_i32_4 = arith.constant 0 : i32
    %18 = vector.broadcast %c0_i32_4 : i32 to vector<2x256xi32>
    %19 = arith.cmpi eq, %17, %18 : vector<2x256xi32>
    %c15_i32 = arith.constant 15 : i32
    %20 = vector.broadcast %c15_i32 : i32 to vector<2x256xi32>
    %21 = arith.cmpi eq, %17, %20 : vector<2x256xi32>
    %c16_i32_5 = arith.constant 16 : i32
    %22 = vector.broadcast %c16_i32_5 : i32 to vector<2x256xi32>
    %23 = arith.cmpi slt, %1, %22 : vector<2x256xi32>
    %c240_i32 = arith.constant 240 : i32
    %24 = vector.broadcast %c240_i32 : i32 to vector<2x256xi32>
    %25 = arith.cmpi sge, %1, %24 : vector<2x256xi32>
    %c255_i32 = arith.constant 255 : i32
    %26 = tpu.dynamic_rotate %0 by %c255_i32 dim 1 : vector<2x256xf32>, i32 -> vector<2x256xf32>
    %cst = arith.constant 0.000000e+00 : f32
    %27 = vector.broadcast %cst : f32 to vector<2x256xf32>
    %28 = arith.select %21, %27, %26 : vector<2x256xi1>, vector<2x256xf32>
    %c1_i32_6 = arith.constant 1 : i32
    %29 = tpu.dynamic_rotate %0 by %c1_i32_6 dim 1 : vector<2x256xf32>, i32 -> vector<2x256xf32>
    %cst_7 = arith.constant 0.000000e+00 : f32
    %30 = vector.broadcast %cst_7 : f32 to vector<2x256xf32>
    %31 = arith.select %19, %30, %29 : vector<2x256xi1>, vector<2x256xf32>
    %32 = arith.subf %28, %31 : vector<2x256xf32>
    %33 = arith.addf %28, %31 : vector<2x256xf32>
    %34 = arith.addf %0, %0 : vector<2x256xf32>
    %35 = arith.addf %33, %34 : vector<2x256xf32>
    %c16_i32_8 = arith.constant 16 : i32
    %36 = tpu.dynamic_rotate %32 by %c16_i32_8 dim 1 : vector<2x256xf32>, i32 -> vector<2x256xf32>
    %cst_9 = arith.constant 0.000000e+00 : f32
    %37 = vector.broadcast %cst_9 : f32 to vector<2x256xf32>
    %38 = arith.select %23, %37, %36 : vector<2x256xi1>, vector<2x256xf32>
    %c240_i32_10 = arith.constant 240 : i32
    %39 = tpu.dynamic_rotate %32 by %c240_i32_10 dim 1 : vector<2x256xf32>, i32 -> vector<2x256xf32>
    %cst_11 = arith.constant 0.000000e+00 : f32
    %40 = vector.broadcast %cst_11 : f32 to vector<2x256xf32>
    %41 = arith.select %25, %40, %39 : vector<2x256xi1>, vector<2x256xf32>
    %42 = arith.addf %38, %41 : vector<2x256xf32>
    %43 = arith.addf %32, %32 : vector<2x256xf32>
    %44 = arith.addf %42, %43 : vector<2x256xf32>
    %45 = math.absf %44 : vector<2x256xf32>
    %c16_i32_12 = arith.constant 16 : i32
    %46 = tpu.dynamic_rotate %35 by %c16_i32_12 dim 1 : vector<2x256xf32>, i32 -> vector<2x256xf32>
    %cst_13 = arith.constant 0.000000e+00 : f32
    %47 = vector.broadcast %cst_13 : f32 to vector<2x256xf32>
    %48 = arith.select %23, %47, %46 : vector<2x256xi1>, vector<2x256xf32>
    %c240_i32_14 = arith.constant 240 : i32
    %49 = tpu.dynamic_rotate %35 by %c240_i32_14 dim 1 : vector<2x256xf32>, i32 -> vector<2x256xf32>
    %cst_15 = arith.constant 0.000000e+00 : f32
    %50 = vector.broadcast %cst_15 : f32 to vector<2x256xf32>
    %51 = arith.select %25, %50, %49 : vector<2x256xi1>, vector<2x256xf32>
    %52 = arith.subf %48, %51 : vector<2x256xf32>
    %53 = math.absf %52 : vector<2x256xf32>
    %54 = arith.addf %45, %53 : vector<2x256xf32>
    %c0_16 = arith.constant 0 : index
    %c0_17 = arith.constant 0 : index
    %55 = vector.load %arg2[%c0_16, %c0_17] : memref<2x256xf32, #tpu.memory_space<vmem>>, vector<2x256xf32>
    tpu.vector_store %arg2[%c0_16, %c0_17], %54 {strides = array<i32>} : memref<2x256xf32, #tpu.memory_space<vmem>>, vector<2x256xf32>,
    return
  }
  func.func @transform_0(%arg0: i32) -> (i32, i32) {
    %c0_i32 = arith.constant 0 : i32
    %c0_i32_0 = arith.constant 0 : i32
    return %arg0, %c0_i32 : i32, i32
  }
  func.func @transform_1(%arg0: i32) -> (i32, i32) {
    %c0_i32 = arith.constant 0 : i32
    %c0_i32_0 = arith.constant 0 : i32
    return %arg0, %c0_i32 : i32, i32
  }
}

</mosaic_0001>

<bundles_post_ra>
// kernel: tpu_custom_call.1
= control target key start
LH: loop header
LB: loop body
LE: loop exit
PB: predicated region body
PF: predicated region fallthrough
CT: control target
= control target key end

     0   :  { %6 = vsyncpa [#allocation3], 0  ;;  %s288_s0 = inlined_call_operand.hbm [shape: f32[2,256], index: 0, kind: input, shape index: {}]   ;;  %s289_s1 = inlined_call_operand.hbm [shape: f32[2,256], index: 1, kind: output, shape index: {}]  }
   0x1   :  { %7 = vsyncpa [#allocation4], 0  ;;  %s13_s8 = sshll.u32 %s288_s0, 4  ;;  %s230_s9 = smov [#allocation2]   ;;  %s14_s8 = int_to_ptr.hbm [resolvable:$true] %s13_s8 }
   0x2   :  { %s15_s10 = sshll.u32 %s230_s9, 4  ;;  %s16_s10 = int_to_ptr.vmem [resolvable:$true] %s15_s10 }
   0x3   :  { %18 = dma.hbm_to_vmem [thread:$0]  %s14_s8, 64, %s16_s10, [#allocation3]  }
   0x4   :  { %226 = dma.done.wait [#allocation3], 64  }
   0x5   :  { %227 = vsyncadd [#allocation3], 4294967232  ;;  %v23_v0 = vld [vmem:[#allocation2] sm:$0xf]  ;;  %s231_s11 = smov 127   ;;  %s232_s12 = smov 1   ;;  %v24_v6 = vlaneseq }
   0x6   :  { %60 = vst [vmem:[#allocation1] ss:$4 sm:$0xff] %v23_v0  ;;  %v92_v3 = vadd.f32 %v23_v0, %v23_v0  ;;  %s233_s0 = smov 16   ;;  %s234_s13 = smov 112   ;;  %vm151_vm9 = vcmask 1041408  }
   0x7   :  { %v249_v8 = vand.u32 127, %v24_v6  ;;  %s235_s14 = smov [#allocation5]   ;;  %s162_s18 = sshll.u32 %s289_s1, 4  ;;  %s163_s18 = int_to_ptr.hbm [resolvable:$true] %s162_s18 }
   0x8   :  { %s160_s15 = sshll.u32 %s235_s14, 4  ;;  %s161_s15 = int_to_ptr.vmem [resolvable:$true] %s160_s15 }
   0x9   :  { %v252_v9 = vadd.s32 128, %v249_v8  ;;  %v31_v11 = vand.u32 15, %v249_v8  ;;  %vm69_vm0 = vcmp.lt.s32.totalorder %v249_v8, 127  ;;  %vm83_vm3 = vcmp.lt.s32.totalorder %v249_v8, 1 }
   0xa   :  { %vm113_vm6 = vcmp.lt.s32.totalorder %v249_v8, 112  ;;  %vm55_vm7 = vcmp.lt.s32.totalorder %v249_v8, 16 }
   0xb   :  { %v38_v12 = vand.u32 15, %v252_v9  ;;  %vm53_vm1 = vcmp.eq.s32.totalorder %v31_v11, 15  ;;  %vm51_vm4 = vcmp.eq.s32.totalorder %v31_v11, 0  ;;  %vm58_vm8 = vcmp.ge.s32.totalorder %v252_v9, 240 }
   0xd   :  { %v61_v1 = vld.sshfl [vmem:[#allocation1] sm:$0xff pattern:$0x73625140]  ;;  %v62_v2 = vld.sshfl [vmem:[#allocation1 + $0x8] sm:$0xff pattern:$0x73625140] }
   0xe   :  { %65 = vrot.lane.b32.xlu0 %v61_v1, %s231_s11  ;;  %74 = vst [vmem:[#allocation1] ss:$4 sm:$0xff] %v23_v0  ;;  %vm54_vm2 = vcmp.eq.s32.totalorder %v38_v12, 15  ;;  %vm52_vm5 = vcmp.eq.s32.totalorder %v38_v12, 0 }
  0x15   :  { %v75_v4 = vld.sshfl [vmem:[#allocation1] sm:$0xff pattern:$0x73625140]  ;;  %v76_v5 = vld.sshfl [vmem:[#allocation1 + $0x8] sm:$0xff pattern:$0x73625140] }
  0x16   :  { %67 = vrot.lane.b32.xlu0 %v62_v2, %s231_s11  ;;  %79 = vrot.lane.b32.xlu1 %v75_v4, %s232_s12  ;;  %94 = vst [vmem:[#allocation1] ss:$4 sm:$0xff] %v92_v3 }
  0x1d   :  { %v96_v27 = vld.sshfl [vmem:[#allocation1 + $0x8] sm:$0xff pattern:$0x73625140]  ;;  %v95_v28 = vld.sshfl [vmem:[#allocation1] sm:$0xff pattern:$0x73625140] }
  0x1e   :  { %81 = vrot.lane.b32.xlu1 %v76_v5, %s232_s12 }
  0x80   :  { %v66_v7 = vpop.permute.xlu0 %65 }
  0x88   :  { %v80_v10 = vpop.permute.xlu1 %79  ;;  %v68_v13 = vpop.permute.xlu0 %67 }
  0x89   :  { %v70_v14 = vsel %vm69_vm0, %v66_v7, %v68_v13  ;;  %v71_v15 = vsel %vm69_vm0, %v68_v13, %v66_v7 }
  0x8a   :  { %v72_v19 = vsel %vm53_vm1, 0.0, %v70_v14  ;;  %v73_v20 = vsel %vm54_vm2, 0.0, %v71_v15 }
  0x90   :  { %v82_v16 = vpop.permute.xlu1 %81 }
  0x91   :  { %v84_v17 = vsel %vm83_vm3, %v80_v10, %v82_v16  ;;  %v85_v18 = vsel %vm83_vm3, %v82_v16, %v80_v10 }
  0x92   :  { %v86_v21 = vsel %vm51_vm4, 0.0, %v85_v18  ;;  %v87_v22 = vsel %vm52_vm5, 0.0, %v84_v17 }
  0x93   :  { %v88_v23 = vsub.f32 %v72_v19, %v86_v21  ;;  %v89_v24 = vsub.f32 %v73_v20, %v87_v22  ;;  %v91_v25 = vadd.f32 %v87_v22, %v73_v20  ;;  %v90_v26 = vadd.f32 %v86_v21, %v72_v19 }
  0x95   :  { %101 = vrot.lane.b32.xlu0 %v88_v23, %s233_s0  ;;  %109 = vrot.lane.b32.xlu2 %v88_v23, %s234_s13  ;;  %v100_v29 = vadd.f32 %v96_v27, %v91_v25  ;;  %v99_v30 = vadd.f32 %v95_v28, %v90_v26  ;;  %v121_v44 = vadd.f32 %v89_v24, %v89_v24 }
  0x96   :  { %103 = vrot.lane.b32.xlu1 %v89_v24, %s233_s0  ;;  %v120_v46 = vadd.f32 %v88_v23, %v88_v23 }
  0x9d   :  { %111 = vrot.lane.b32.xlu2 %v89_v24, %s234_s13  ;;  %136 = vrot.lane.b32.xlu0 %v100_v29, %s234_s13 }
  0x9e   :  { %126 = vrot.lane.b32.xlu1 %v99_v30, %s233_s0 }
  0xa5   :  { %134 = vrot.lane.b32.xlu2 %v99_v30, %s234_s13 }
  0xad   :  { %128 = vrot.lane.b32.xlu2 %v100_v29, %s233_s0 }
  0xef   :  { %v110_v31 = vpop.permute.xlu2 %109 }
  0xf7   :  { %v112_v32 = vpop.permute.xlu2 %111 }
  0xf8   :  { %v115_v35 = vsel %vm113_vm6, %v112_v32, %v110_v31  ;;  %v114_v42 = vsel %vm113_vm6, %v110_v31, %v112_v32 }
  0xf9   :  { %v117_v39 = vsel %vm58_vm8, 0.0, %v115_v35 }
  0xff   :  { %v135_v33 = vpop.permute.xlu2 %134 }
 0x107   :  { %v102_v34 = vpop.permute.xlu0 %101  ;;  %v129_v48 = vpop.permute.xlu2 %128 }
 0x108   :  { %v104_v36 = vpop.permute.xlu1 %103 }
 0x109   :  { %v105_v37 = vsel %vm55_vm7, %v102_v34, %v104_v36  ;;  %v106_v38 = vsel %vm55_vm7, %v104_v36, %v102_v34 }
 0x10a   :  { %v107_v40 = vsel %vm55_vm7, 0.0, %v106_v38  ;;  %v119_v41 = vadd.f32 %v117_v39, %v105_v37 }
 0x10b   :  { %v118_v43 = vadd.f32 %v114_v42, %v107_v40 }
 0x10c   :  { %v123_v47 = vadd.f32 %v121_v44, %v119_v41 }
 0x10d   :  { %v122_v55 = vadd.f32 %v120_v46, %v118_v43 }
 0x10e   :  { %v125_v59 = vand.u32 2147483647, %v123_v47 }
 0x10f   :  { %v137_v45 = vpop.permute.xlu0 %136  ;;  %v124_v62 = vand.u32 2147483647, %v122_v55 }
 0x110   :  { %v138_v49 = vsel %vm113_vm6, %v135_v33, %v137_v45  ;;  %v139_v50 = vsel %vm113_vm6, %v137_v45, %v135_v33  ;;  %v127_v51 = vpop.permute.xlu1 %126 }
 0x111   :  { %v141_v52 = vsel %vm58_vm8, 0.0, %v139_v50  ;;  %v130_v53 = vsel %vm55_vm7, %v127_v51, %v129_v48  ;;  %v131_v54 = vsel %vm55_vm7, %v129_v48, %v127_v51 }
 0x112   :  { %v132_v56 = vsel %vm55_vm7, 0.0, %v131_v54  ;;  %v143_v57 = vsub.f32 %v130_v53, %v141_v52 }
 0x113   :  { %v142_v58 = vsub.f32 %v132_v56, %v138_v49 }
 0x114   :  { %v145_v60 = vand.u32 2147483647, %v143_v57 }
 0x115   :  { %v144_v61 = vand.u32 2147483647, %v142_v58 }
 0x116   :  { %v147_v63 = vadd.f32 %v145_v60, %v125_v59 }
 0x117   :  { %v146_v0 = vadd.f32 %v144_v61, %v124_v62 }
 0x118   :  { %v150_v1 = vrot.slane %v147_v63, 6 }
 0x11a   :  { %v152_v2 = vsel %vm151_vm9, %v146_v0, %v150_v1 }
 0x11b   :  { %154 = vst [vmem:[#allocation5] sm:$0xf] %v152_v2 }
 0x11c   :  { %165 = dma.vmem_to_hbm [thread:$0]  %s161_s15, 64, %s163_s18, [#allocation4]  }
 0x11d   :  { %228 = dma.done.wait [#allocation4], 64  }
 0x11e   :  { %229 = vsyncadd [#allocation4], 4294967232 }
 0x11f   :  { %170 = vsyncpa [#allocation3], 1 }
 0x120   :  { %171 = vsyncpa [#allocation4], 1 }

</bundles_post_ra>
